<compile_context>
chip_gen: v5e
topology: v5e:2x2
jax: 0.10.0
libtpu: 0.0.40
codegen_flags: <defaults>
</compile_context>

<pallas_src>
import jax
import jax.numpy as jnp
from jax import lax
from jax.experimental import pallas as pl
from jax.experimental.pallas import tpu as pltpu


def _round_up(x: int, m: int) -> int:
    return (x + m - 1) // m * m


# ----------------------------------------------------------------------------
# Fused FC2 kernel: one (tm, C) output tile; grid axis 1 runs over hidden (H).
# ----------------------------------------------------------------------------
def _fc2_fused_kernel(x_ref, w1t_ref, b1_ref, w2t_ref, b2_ref, o_ref):
    h_idx = pl.program_id(1)

    @pl.when(h_idx == 0)
    def _():
        # Seed the resident f32 output tile with the layer-2 bias.
        o_ref[...] = jnp.broadcast_to(b2_ref[...], o_ref.shape).astype(o_ref.dtype)

    # Layer 1 for this hidden slice: (tm, F) @ (F, th) -> (tm, th), f32 acc.
    h = jnp.dot(
        x_ref[...].astype(jnp.bfloat16),
        w1t_ref[...],
        preferred_element_type=jnp.float32,
    )
    h = (h + b1_ref[...]).astype(jnp.bfloat16)  # bias in f32, then bf16 MXU feed

    # Layer 2 partial contraction: (tm, th) @ (th, C) -> (tm, C),
    # accumulated directly into the resident output tile (f32).
    o_ref[...] += jnp.dot(h, w2t_ref[...], preferred_element_type=jnp.float32)


# ----------------------------------------------------------------------------
# One-time parameter packing (hoisted out of the forward path).
# ----------------------------------------------------------------------------
def pack_fc2_params(w1, b1, w2, b2, *, compute_dtype=jnp.bfloat16):
    """w1:(H,F), w2:(C,H) -> (W1T bf16 (F,H), b1 f32 (1,H), W2T bf16 (H,C), b2 f32 (1,C))."""
    H, F = w1.shape
    C, H2 = w2.shape
    assert H == H2, (w1.shape, w2.shape)
    w1t = jnp.asarray(w1).T.astype(compute_dtype)                      # (F, H)
    w2t = jnp.asarray(w2).T.astype(compute_dtype)                      # (H, C)
    b1r = (jnp.zeros((H,), jnp.float32) if b1 is None
           else jnp.asarray(b1, jnp.float32)).reshape(1, H)
    b2r = (jnp.zeros((C,), jnp.float32) if b2 is None
           else jnp.asarray(b2, jnp.float32)).reshape(1, C)
    return w1t, b1r, w2t, b2r


def _choose_th(F, C, tm, H, x_itemsize, budget_bytes=12 * 1024 * 1024):
    """Largest hidden-slice th (dividing H) whose streaming footprint fits VMEM."""
    for th in (H, 1024, 512, 256, 128):
        if H % th:
            continue
        streamed = 2 * (tm * F * x_itemsize        # x tile (double-buffered)
                        + F * th * 2               # W1T tile (bf16)
                        + th * 4                   # b1 tile (f32)
                        + th * C * 2               # W2T tile (bf16)
                        + C * 4)                   # b2 tile (f32)
        resident = tm * th * 4 + tm * C * 4        # h temporary + output tile
        if streamed + resident <= budget_bytes:
            return th
    # TODO(synk): tile the F (num_features) axis as well for extremely large
    # num_features; not needed for classifier-head sized inputs.
    return 128


# ----------------------------------------------------------------------------
# Forward: out = (x @ W1^T + b1) @ W2^T + b2, fused in one pallas_call.
# ----------------------------------------------------------------------------
def fc2_forward(x, packed_params, *, tm=256):
    w1t, b1r, w2t, b2r = packed_params
    F, H = w1t.shape
    H2, C = w2t.shape
    assert H == H2 and b1r.shape == (1, H) and b2r.shape == (1, C)

    lead = x.shape[:-1]
    x2d = x.reshape(-1, F)
    M = x2d.shape[0]

    # M tile: multiple of 8 (sublane), clamped to the (padded) batch.
    tm = min(tm, _round_up(M, 8))
    Mp = _round_up(M, tm)
    if Mp != M:
        x2d = jnp.pad(x2d, ((0, Mp - M), (0, 0)))

    th = _choose_th(F, C, tm, H, x2d.dtype.itemsize)
    grid = (Mp // tm, H // th)

    out = pl.pallas_call(
        _fc2_fused_kernel,
        out_shape=jax.ShapeDtypeStruct((Mp, C), jnp.float32),
        grid_spec=pltpu.PrefetchScalarGridSpec(
            num_scalar_prefetch=0,
            grid=grid,
            in_specs=[
                pl.BlockSpec((tm, F), lambda i, h: (i, 0)),   # x tile (full F)
                pl.BlockSpec((F, th), lambda i, h: (0, h)),   # W1T slice
                pl.BlockSpec((1, th), lambda i, h: (0, h)),   # b1 slice
                pl.BlockSpec((th, C), lambda i, h: (h, 0)),   # W2T slice (full C)
                pl.BlockSpec((1, C), lambda i, h: (0, 0)),    # b2
            ],
            out_specs=pl.BlockSpec((tm, C), lambda i, h: (i, 0)),
        ),
        compiler_params=pltpu.CompilerParams(
            dimension_semantics=("parallel", "arbitrary"),
        ),
    )(x2d, w1t, b1r, w2t, b2r)

    return out[:M].reshape(*lead, C)


# ----------------------------------------------------------------------------
# Init mirroring torch.nn.Linear defaults: uniform(+/- 1/sqrt(fan_in)).
# ----------------------------------------------------------------------------
def _init_linear(key, out_features, in_features, bias):
    kw, kb = jax.random.split(key)
    bound = 1.0 / (in_features ** 0.5)
    w = jax.random.uniform(kw, (out_features, in_features), jnp.float32,
                           minval=-bound, maxval=bound)
    b = (jax.random.uniform(kb, (out_features,), jnp.float32,
                            minval=-bound, maxval=bound) if bias else None)
    return w, b


if __name__ == "__main__":
    key = jax.random.PRNGKey(0)
    kx, k1, k2 = jax.random.split(key, 3)

    batch = 8
    num_features = 32
    num_classes = 16
    hidden = 2048            # hard-coded in FC2.forward
    bias_flag = True

    x = jax.random.normal(kx, (batch, num_features), dtype=jnp.float32)
    w1, b1 = _init_linear(k1, hidden, num_features, bias_flag)
    w2, b2 = _init_linear(k2, num_classes, hidden, bias_flag)

    # One-time weight packing (transpose + bf16 cast) hoisted out of forward.
    params = pack_fc2_params(w1, b1, w2, b2)

    out = fc2_forward(x, params)
    out = jax.block_until_ready(out)

    # Plain-JAX f32 reference.
    h_ref = jnp.dot(x, w1.T, precision=lax.Precision.HIGHEST)
    if b1 is not None:
        h_ref = h_ref + b1
    ref = jnp.dot(h_ref, w2.T, precision=lax.Precision.HIGHEST)
    if b2 is not None:
        ref = ref + b2

    assert out.shape == (batch, num_classes)
    # bf16 MXU feed (f32 accumulation) => tolerance loosened vs f32 reference.
    assert jnp.allclose(out, ref, atol=2e-2, rtol=2e-2), (
        "mismatch vs reference, max abs err = %f"
        % float(jnp.max(jnp.abs(out - ref))))

    print("KERNEL_OK")
</pallas_src>

<mosaic_0001>
module attributes {stable_mosaic.version = 11 : i64} {
  func.func @_fc2_fused_kernel(%arg0: i32, %arg1: i32, %arg2: memref<8x32xf32, #tpu.memory_space<vmem>>, %arg3: memref<32x2048xbf16, #tpu.memory_space<vmem>>, %arg4: memref<1x2048xf32, #tpu.memory_space<vmem>>, %arg5: memref<2048x16xbf16, #tpu.memory_space<vmem>>, %arg6: memref<1x16xf32, #tpu.memory_space<vmem>>, %arg7: memref<8x16xf32, #tpu.memory_space<vmem>>) attributes {dimension_semantics = [#tpu.dimension_semantics<parallel>, #tpu.dimension_semantics<arbitrary>], iteration_bounds = array<i64: 1, 1>, scalar_prefetch = 0 : i64, scratch_operands = 0 : i64, tpu.core_type = #tpu.core_type<tc>, window_params = [{transform_indices = @transform_0, window_bounds = array<i64: 8, 32>}, {transform_indices = @transform_1, window_bounds = array<i64: 32, 2048>}, {transform_indices = @transform_2, window_bounds = array<i64: 1, 2048>}, {transform_indices = @transform_3, window_bounds = array<i64: 2048, 16>}, {pipeline_mode = #tpu.pipeline_mode<synchronous>, transform_indices = @transform_4, window_bounds = array<i64: 1, 16>}, {transform_indices = @transform_5, window_bounds = array<i64: 8, 16>}]} {
    %c0_i32 = arith.constant 0 : i32
    %0 = arith.cmpi eq, %arg1, %c0_i32 : i32
    %1 = arith.extui %0 : i1 to i32
    %c0_i32_0 = arith.constant 0 : i32
    %2 = arith.cmpi ne, %1, %c0_i32_0 : i32
    scf.if %2 {
      %c0_13 = arith.constant 0 : index
      %c0_14 = arith.constant 0 : index
      %16 = vector.load %arg6[%c0_13, %c0_14] : memref<1x16xf32, #tpu.memory_space<vmem>>, vector<1x16xf32>
      %17 = vector.shape_cast %16 : vector<1x16xf32> to vector<1x16xf32>
      %18 = vector.broadcast %17 : vector<1x16xf32> to vector<8x16xf32>
      %c0_15 = arith.constant 0 : index
      %c0_16 = arith.constant 0 : index
      %19 = vector.load %arg7[%c0_15, %c0_16] : memref<8x16xf32, #tpu.memory_space<vmem>>, vector<8x16xf32>
      tpu.vector_store %arg7[%c0_15, %c0_16], %18 {strides = array<i32>} : memref<8x16xf32, #tpu.memory_space<vmem>>, vector<8x16xf32>,
    } else {
    }
    %c0 = arith.constant 0 : index
    %c0_1 = arith.constant 0 : index
    %3 = vector.load %arg2[%c0, %c0_1] : memref<8x32xf32, #tpu.memory_space<vmem>>, vector<8x32xf32>
    %4 = arith.truncf %3 : vector<8x32xf32> to vector<8x32xbf16>
    %c0_2 = arith.constant 0 : index
    %c0_3 = arith.constant 0 : index
    %5 = vector.load %arg3[%c0_2, %c0_3] : memref<32x2048xbf16, #tpu.memory_space<vmem>>, vector<32x2048xbf16>
    %cst = arith.constant dense<0.000000e+00> : vector<8x2048xf32>
    %6 = tpu.matmul %4, %5, %cst {dimension_numbers = #tpu.dot_dimension_numbers<[1], [0], [0], [1], [0, 0, 1, 1], [], []>} : vector<8x32xbf16>, vector<32x2048xbf16>, vector<8x2048xf32> -> vector<8x2048xf32>
    %c0_4 = arith.constant 0 : index
    %c0_5 = arith.constant 0 : index
    %7 = vector.load %arg4[%c0_4, %c0_5] : memref<1x2048xf32, #tpu.memory_space<vmem>>, vector<1x2048xf32>
    %8 = vector.broadcast %7 : vector<1x2048xf32> to vector<8x2048xf32>
    %9 = arith.addf %6, %8 : vector<8x2048xf32>
    %10 = arith.truncf %9 : vector<8x2048xf32> to vector<8x2048xbf16>
    %c0_6 = arith.constant 0 : index
    %c0_7 = arith.constant 0 : index
    %11 = vector.load %arg7[%c0_6, %c0_7] : memref<8x16xf32, #tpu.memory_space<vmem>>, vector<8x16xf32>
    %c0_8 = arith.constant 0 : index
    %c0_9 = arith.constant 0 : index
    %12 = vector.load %arg5[%c0_8, %c0_9] : memref<2048x16xbf16, #tpu.memory_space<vmem>>, vector<2048x16xbf16>
    %cst_10 = arith.constant dense<0.000000e+00> : vector<8x16xf32>
    %13 = tpu.matmul %10, %12, %cst_10 {dimension_numbers = #tpu.dot_dimension_numbers<[1], [0], [0], [1], [0, 0, 1, 1], [], []>} : vector<8x2048xbf16>, vector<2048x16xbf16>, vector<8x16xf32> -> vector<8x16xf32>
    %14 = arith.addf %11, %13 : vector<8x16xf32>
    %c0_11 = arith.constant 0 : index
    %c0_12 = arith.constant 0 : index
    %15 = vector.load %arg7[%c0_11, %c0_12] : memref<8x16xf32, #tpu.memory_space<vmem>>, vector<8x16xf32>
    tpu.vector_store %arg7[%c0_11, %c0_12], %14 {strides = array<i32>} : memref<8x16xf32, #tpu.memory_space<vmem>>, vector<8x16xf32>,
    return
  }
  func.func @transform_0(%arg0: i32, %arg1: i32) -> (i32, i32) {
    %c0_i32 = arith.constant 0 : i32
    %c0_i32_0 = arith.constant 0 : i32
    return %arg0, %c0_i32 : i32, i32
  }
  func.func @transform_1(%arg0: i32, %arg1: i32) -> (i32, i32) {
    %c0_i32 = arith.constant 0 : i32
    %c0_i32_0 = arith.constant 0 : i32
    return %c0_i32, %arg1 : i32, i32
  }
  func.func @transform_2(%arg0: i32, %arg1: i32) -> (i32, i32) {
    %c0_i32 = arith.constant 0 : i32
    %c0_i32_0 = arith.constant 0 : i32
    return %c0_i32, %arg1 : i32, i32
  }
  func.func @transform_3(%arg0: i32, %arg1: i32) -> (i32, i32) {
    %c0_i32 = arith.constant 0 : i32
    %c0_i32_0 = arith.constant 0 : i32
    return %arg1, %c0_i32 : i32, i32
  }
  func.func @transform_4(%arg0: i32, %arg1: i32) -> (i32, i32) {
    %c0_i32 = arith.constant 0 : i32
    %c0_i32_0 = arith.constant 0 : i32
    %c0_i32_1 = arith.constant 0 : i32
    return %c0_i32, %c0_i32_0 : i32, i32
  }
  func.func @transform_5(%arg0: i32, %arg1: i32) -> (i32, i32) {
    %c0_i32 = arith.constant 0 : i32
    %c0_i32_0 = arith.constant 0 : i32
    return %arg0, %c0_i32 : i32, i32
  }
}

</mosaic_0001>

<bundles_post_ra>
// kernel: tpu_custom_call.1
= control target key start
LH: loop header
LB: loop body
LE: loop exit
PB: predicated region body
PF: predicated region fallthrough
CT: control target
= control target key end

     0   :  { %vm262_vm0 = vcmask 261120   ;;  %s3264_s0 = inlined_call_operand.vmem [shape: f32[8,32], index: 0, kind: input, shape index: {}]   ;;  %s3265_s1 = inlined_call_operand.vmem [shape: bf16[32,2048], index: 1, kind: input, shape index: {}]   ;;  %s3266_s2 = inlined_call_operand.vmem [shape: f32[1,2048], index: 2, kind: input, shape index: {}]   ;;  %s3267_s3 = inlined_call_operand.vmem [shape: bf16[2048,16], index: 3, kind: input, shape index: {}]   ;;  %s3268_s4 = inlined_call_operand.vmem [shape: f32[1,16], index: 4, kind: input, shape index: {}]   ;;  %s3269_s5 = inlined_call_operand.hbm [shape: f32[8,16], index: 5, kind: output, shape index: {}]  }
   0x1   :  { %v1808_v0 = vld [vmem:[%s3265_s1 + $0x80] sm:$0xf]  ;;  %v1816_v2 = vld [vmem:[%s3265_s1 + $0x88] sm:$0xf]  ;;  %v2415_v5 = vld [vmem:[%s3265_s1 + $0x8c] sm:$0xf] }
   0x2   :  { %v2422_v1 = vld [vmem:[%s3265_s1 + $0xbc] sm:$0xf0]  ;;  %v2423_v4 = vld [vmem:[%s3265_s1 + $0xc4] sm:$0xf0]  ;;  %v1818_v6 = vld [vmem:[%s3265_s1 + $0xc8] sm:$0xf0] }
   0x3   :  { %v1809_v3 = vor.u32 %v2422_v1, %v1808_v0  ;;  %v1817_v7 = vor.u32 %v2423_v4, %v1816_v2  ;;  %v1821_v8 = vor.u32 %v2415_v5, %v1818_v6  ;;  %v2414_v9 = vld [vmem:[%s3265_s1 + $0x84] sm:$0xf]  ;;  %v1744_v11 = vld [vmem:[%s3265_s1] sm:$0xf]  ;;  %v1752_v14 = vld [vmem:[%s3265_s1 + $0x8] sm:$0xf] }
   0x4   :  { %v1810_v10 = vld [vmem:[%s3265_s1 + $0xc0] sm:$0xf0]  ;;  %v2406_v13 = vld [vmem:[%s3265_s1 + $0x3c] sm:$0xf0]  ;;  %v2407_v15 = vld [vmem:[%s3265_s1 + $0x44] sm:$0xf0] }
   0x5   :  { %272 = vmatpush.bf16.msra.mxu0 %v1809_v3  ;;  %v1813_v12 = vor.u32 %v2414_v9, %v1810_v10  ;;  %298 = vmatpush.bf16.msra.mxu2 %v1817_v7  ;;  %v1745_v16 = vor.u32 %v2406_v13, %v1744_v11  ;;  %v1753_v17 = vor.u32 %v2407_v15, %v1752_v14  ;;  %v2399_v18 = vld [vmem:[%s3265_s1 + $0xc] sm:$0xf]  ;;  %v2398_v20 = vld [vmem:[%s3265_s1 + $0x4] sm:$0xf]  ;;  %v1824_v24 = vld [vmem:[%s3265_s1 + $0x90] sm:$0xf] }
   0x6   :  { %311 = vmatpush.bf16.msra.mxu3 %v1821_v8  ;;  %v1754_v19 = vld [vmem:[%s3265_s1 + $0x48] sm:$0xf0]  ;;  %v1746_v22 = vld [vmem:[%s3265_s1 + $0x40] sm:$0xf0]  ;;  %v2424_v27 = vld [vmem:[%s3265_s1 + $0xcc] sm:$0xf0] }
   0x7   :  { %285 = vmatpush.bf16.msra.mxu1 %v1813_v12  ;;  %v1757_v21 = vor.u32 %v2399_v18, %v1754_v19  ;;  %v32_v23 = vld [vmem:[%s3264_s0] sm:$0xff]  ;;  %v1749_v25 = vor.u32 %v2398_v20, %v1746_v22  ;;  %v1832_v28 = vld [vmem:[%s3265_s1 + $0x98] sm:$0xf]  ;;  %v1825_v30 = vor.u32 %v2424_v27, %v1824_v24  ;;  %v2416_v32 = vld [vmem:[%s3265_s1 + $0x94] sm:$0xf] }
   0x8   :  { %v2671_v26 = vpack.c.bf16 %v32_v23, %v32_v23  ;;  %v2425_v29 = vld [vmem:[%s3265_s1 + $0xd4] sm:$0xf0]  ;;  %v1826_v33 = vld [vmem:[%s3265_s1 + $0xd0] sm:$0xf0]  ;;  %v2417_v34 = vld [vmem:[%s3265_s1 + $0x9c] sm:$0xf] }
   0x9   :  { %273 = vmatpush.bf16.msra.mxu0 %v1745_v16  ;;  %v1833_v31 = vor.u32 %v2425_v29, %v1832_v28  ;;  %299 = vmatpush.bf16.msra.mxu2 %v1753_v17  ;;  %v1834_v35 = vld [vmem:[%s3265_s1 + $0xd8] sm:$0xf0]  ;;  %v1760_v36 = vld [vmem:[%s3265_s1 + $0x10] sm:$0xf]  ;;  %v1829_v38 = vor.u32 %v2416_v32, %v1826_v33  ;;  %v1768_v41 = vld [vmem:[%s3265_s1 + $0x18] sm:$0xf] }
   0xa   :  { %312 = vmatpush.bf16.msra.mxu3 %v1757_v21  ;;  %v2408_v37 = vld [vmem:[%s3265_s1 + $0x4c] sm:$0xf0]  ;;  %v1837_v39 = vor.u32 %v2417_v34, %v1834_v35  ;;  %v2409_v42 = vld [vmem:[%s3265_s1 + $0x54] sm:$0xf0]  ;;  %v2400_v43 = vld [vmem:[%s3265_s1 + $0x14] sm:$0xf] }
   0xb   :  { %286 = vmatpush.bf16.msra.mxu1 %v1749_v25  ;;  %v1761_v40 = vor.u32 %v2408_v37, %v1760_v36  ;;  %v1769_v44 = vor.u32 %v2409_v42, %v1768_v41  ;;  %v1762_v45 = vld [vmem:[%s3265_s1 + $0x50] sm:$0xf0]  ;;  %v2401_v46 = vld [vmem:[%s3265_s1 + $0x1c] sm:$0xf]  ;;  %v1840_v48 = vld [vmem:[%s3265_s1 + $0xa0] sm:$0xf] }
   0xc   :  { %1870 = vmatmul.msk.bf16.vlgmr.msra.gmra.mxu0 %vm262_vm0, %v2671_v26  ;;  %v1770_v47 = vld [vmem:[%s3265_s1 + $0x58] sm:$0xf0]  ;;  %1872 = vmatmul.msk.bf16.vlgmr.msra.gmra.mxu2 %vm262_vm0, %v2671_v26  ;;  %v2426_v49 = vld [vmem:[%s3265_s1 + $0xdc] sm:$0xf0]  ;;  %v1848_v50 = vld [vmem:[%s3265_s1 + $0xa8] sm:$0xf]  ;;  %v1765_v56 = vor.u32 %v2400_v43, %v1762_v45 }
   0xd   :  { %324 = vmatpush.bf16.msrb.mxu0 %v1825_v30  ;;  %350 = vmatpush.bf16.msrb.mxu2 %v1833_v31  ;;  %v1773_v51 = vor.u32 %v2401_v46, %v1770_v47  ;;  %v1841_v52 = vor.u32 %v2426_v49, %v1840_v48  ;;  %v2427_v53 = vld [vmem:[%s3265_s1 + $0xe4] sm:$0xf0]  ;;  %v2418_v54 = vld [vmem:[%s3265_s1 + $0xa4] sm:$0xf]  ;;  %v2419_v58 = vld [vmem:[%s3265_s1 + $0xac] sm:$0xf] }
   0xe   :  { %1873 = vmatmul.msk.bf16.vlgmr.msra.gmra.mxu3 %vm262_vm0, %v2671_v26  ;;  %1871 = vmatmul.msk.bf16.vlgmr.msra.gmra.mxu1 %vm262_vm0, %v2671_v26  ;;  %v1842_v55 = vld [vmem:[%s3265_s1 + $0xe0] sm:$0xf0]  ;;  %v1849_v57 = vor.u32 %v2427_v53, %v1848_v50  ;;  %v1850_v59 = vld [vmem:[%s3265_s1 + $0xe8] sm:$0xf0]  ;;  %v1776_v60 = vld [vmem:[%s3265_s1 + $0x20] sm:$0xf] }
   0xf   :  { %363 = vmatpush.bf16.msrb.mxu3 %v1837_v39  ;;  %337 = vmatpush.bf16.msrb.mxu1 %v1829_v38  ;;  %v1845_v61 = vor.u32 %v2418_v54, %v1842_v55  ;;  %v1853_v62 = vor.u32 %v2419_v58, %v1850_v59  ;;  %v2410_v63 = vld [vmem:[%s3265_s1 + $0x5c] sm:$0xf0]  ;;  %v1784_v0 = vld [vmem:[%s3265_s1 + $0x28] sm:$0xf]  ;;  %v2402_v4 = vld [vmem:[%s3265_s1 + $0x24] sm:$0xf] }
  0x10   :  { %v2411_v1 = vld [vmem:[%s3265_s1 + $0x64] sm:$0xf0]  ;;  %v1777_v2 = vor.u32 %v2410_v63, %v1776_v60  ;;  %v1778_v5 = vld [vmem:[%s3265_s1 + $0x60] sm:$0xf0]  ;;  %v2403_v6 = vld [vmem:[%s3265_s1 + $0x2c] sm:$0xf] }
  0x11   :  { %325 = vmatpush.bf16.msrb.mxu0 %v1761_v40  ;;  %351 = vmatpush.bf16.msrb.mxu2 %v1769_v44  ;;  %v1785_v3 = vor.u32 %v2411_v1, %v1784_v0  ;;  %v1786_v7 = vld [vmem:[%s3265_s1 + $0x68] sm:$0xf0]  ;;  %v1781_v9 = vor.u32 %v2402_v4, %v1778_v5 }
  0x12   :  { %v1789_v8 = vor.u32 %v2403_v6, %v1786_v7 }
  0x13   :  { %364 = vmatpush.bf16.msrb.mxu3 %v1773_v51  ;;  %338 = vmatpush.bf16.msrb.mxu1 %v1765_v56 }
  0x15   :  { %376 = vmatpush.bf16.msra.mxu0 %v1841_v52  ;;  %402 = vmatpush.bf16.msra.mxu2 %v1849_v57 }
  0x17   :  { %415 = vmatpush.bf16.msra.mxu3 %v1853_v62  ;;  %389 = vmatpush.bf16.msra.mxu1 %v1845_v61 }
  0x19   :  { %377 = vmatpush.bf16.msra.mxu0 %v1777_v2  ;;  %403 = vmatpush.bf16.msra.mxu2 %v1785_v3 }
  0x1a   :  { %10 = vsyncpa [#allocation3], 0  ;;  %v1864_v10 = vld [vmem:[%s3265_s1 + $0xb8] sm:$0xf]  ;;  %v2421_v12 = vld [vmem:[%s3265_s1 + $0xbc] sm:$0xf] }
  0x1b   :  { %416 = vmatpush.bf16.msra.mxu3 %v1789_v8  ;;  %v2429_v11 = vld [vmem:[%s3265_s1 + $0xf4] sm:$0xf0]  ;;  %390 = vmatpush.bf16.msra.mxu1 %v1781_v9  ;;  %v1866_v13 = vld [vmem:[%s3265_s1 + $0xf8] sm:$0xf0]  ;;  %v1856_v14 = vld [vmem:[%s3265_s1 + $0xb0] sm:$0xf] }
  0x1c   :  { %v2428_v15 = vld [vmem:[%s3265_s1 + $0xec] sm:$0xf0]  ;;  %v1865_v16 = vor.u32 %v2429_v11, %v1864_v10  ;;  %v1869_v17 = vor.u32 %v2421_v12, %v1866_v13  ;;  %v1800_v18 = vld [vmem:[%s3265_s1 + $0x38] sm:$0xf]  ;;  %1874 = vmatmul.msk.bf16.vlgmr.msrb.gmra.mxu0 %vm262_vm0, %v2671_v26  ;;  %v2405_v21 = vld [vmem:[%s3265_s1 + $0x3c] sm:$0xf]  ;;  %1876 = vmatmul.msk.bf16.vlgmr.msrb.gmra.mxu2 %vm262_vm0, %v2671_v26 }
  0x1d   :  { %v2413_v19 = vld [vmem:[%s3265_s1 + $0x74] sm:$0xf0]  ;;  %v1857_v20 = vor.u32 %v2428_v15, %v1856_v14  ;;  %v1802_v22 = vld [vmem:[%s3265_s1 + $0x78] sm:$0xf0]  ;;  %v2420_v23 = vld [vmem:[%s3265_s1 + $0xb4] sm:$0xf] }
  0x1e   :  { %1877 = vmatmul.msk.bf16.vlgmr.msrb.gmra.mxu3 %vm262_vm0, %v2671_v26  ;;  %v1858_v24 = vld [vmem:[%s3265_s1 + $0xf0] sm:$0xf0]  ;;  %v1792_v25 = vld [vmem:[%s3265_s1 + $0x30] sm:$0xf]  ;;  %1875 = vmatmul.msk.bf16.vlgmr.msrb.gmra.mxu1 %vm262_vm0, %v2671_v26  ;;  %v1801_v27 = vor.u32 %v2413_v19, %v1800_v18  ;;  %v1805_v32 = vor.u32 %v2405_v21, %v1802_v22  ;;  %v2437_v35 = vld [vmem:[%s3267_s3 + $0x38] sm:$0xff]  ;;  %vm30_vm1 = vcmask 130048  }
  0x1f   :  { %454 = vmatpush.bf16.msrb.mxu2 %v1865_v16  ;;  %v1861_v28 = vor.u32 %v2420_v23, %v1858_v24  ;;  %v2412_v29 = vld [vmem:[%s3265_s1 + $0x6c] sm:$0xf0]  ;;  %v2404_v30 = vld [vmem:[%s3265_s1 + $0x34] sm:$0xf]  ;;  %467 = vmatpush.bf16.msrb.mxu3 %v1869_v17  ;;  %v2445_v36 = vld [vmem:[%s3267_s3 + $0x78] sm:$0xff]  ;;  %s1733_s10 = sshll.u32 %s3269_s5, 4  ;;  %s1734_s10 = int_to_ptr.hbm [resolvable:$true] %s1733_s10 }
  0x20   :  { %v1794_v31 = vld [vmem:[%s3265_s1 + $0x70] sm:$0xf0]  ;;  %428 = vmatpush.bf16.msrb.mxu0 %v1857_v20  ;;  %v1793_v33 = vor.u32 %v2412_v29, %v1792_v25  ;;  %v2453_v37 = vld [vmem:[%s3267_s3 + $0xb8] sm:$0xff]  ;;  %v2435_v43 = vld [vmem:[%s3267_s3 + $0x28] sm:$0xff] }
  0x21   :  { %441 = vmatpush.bf16.msrb.mxu1 %v1861_v28  ;;  %v1797_v34 = vor.u32 %v2404_v30, %v1794_v31  ;;  %v2461_v38 = vld [vmem:[%s3267_s3 + $0xf8] sm:$0xff]  ;;  %v2436_v39 = vld [vmem:[%s3267_s3 + $0x30] sm:$0xff]  ;;  %v2443_v44 = vld [vmem:[%s3267_s3 + $0x68] sm:$0xff] }
  0x22   :  { %v2444_v40 = vld [vmem:[%s3267_s3 + $0x70] sm:$0xff]  ;;  %v2451_v45 = vld [vmem:[%s3267_s3 + $0xa8] sm:$0xff]  ;;  %v2434_v47 = vld [vmem:[%s3267_s3 + $0x20] sm:$0xff] }
  0x23   :  { %455 = vmatpush.bf16.msrb.mxu2 %v1801_v27  ;;  %468 = vmatpush.bf16.msrb.mxu3 %v1805_v32  ;;  %v2452_v41 = vld [vmem:[%s3267_s3 + $0xb0] sm:$0xff]  ;;  %v2459_v46 = vld [vmem:[%s3267_s3 + $0xe8] sm:$0xff]  ;;  %v2442_v48 = vld [vmem:[%s3267_s3 + $0x60] sm:$0xff] }
  0x24   :  { %429 = vmatpush.bf16.msrb.mxu0 %v1793_v33  ;;  %v2460_v42 = vld [vmem:[%s3267_s3 + $0xf0] sm:$0xff]  ;;  %v2450_v49 = vld [vmem:[%s3267_s3 + $0xa0] sm:$0xff]  ;;  %v2433_v51 = vld [vmem:[%s3267_s3 + $0x18] sm:$0xff] }
  0x25   :  { %442 = vmatpush.bf16.msrb.mxu1 %v1797_v34  ;;  %v2458_v50 = vld [vmem:[%s3267_s3 + $0xe0] sm:$0xff]  ;;  %v2441_v52 = vld [vmem:[%s3267_s3 + $0x58] sm:$0xff]  ;;  %v2432_v55 = vld [vmem:[%s3267_s3 + $0x10] sm:$0xff] }
  0x26   :  { %v2449_v53 = vld [vmem:[%s3267_s3 + $0x98] sm:$0xff]  ;;  %v2440_v56 = vld [vmem:[%s3267_s3 + $0x50] sm:$0xff]  ;;  %v2431_v58 = vld [vmem:[%s3267_s3 + $0x8] sm:$0xff] }
  0x27   :  { %v2457_v54 = vld [vmem:[%s3267_s3 + $0xd8] sm:$0xff]  ;;  %v2448_v57 = vld [vmem:[%s3267_s3 + $0x90] sm:$0xff]  ;;  %v2439_v59 = vld [vmem:[%s3267_s3 + $0x48] sm:$0xff] }
  0x28   :  { %v2447_v60 = vld [vmem:[%s3267_s3 + $0x88] sm:$0xff]  ;;  %v2430_v62 = vld [vmem:[%s3267_s3] sm:$0xff]  ;;  %v2469_v63 = vld [vmem:[%s3267_s3 + $0x138] sm:$0xff] }
  0x29   :  { %v2455_v61 = vld [vmem:[%s3267_s3 + $0xc8] sm:$0xff]  ;;  %v2438_v0 = vld [vmem:[%s3267_s3 + $0x40] sm:$0xff]  ;;  %v2477_v1 = vld [vmem:[%s3267_s3 + $0x178] sm:$0xff] }
  0x2a   :  { %v2446_v2 = vld [vmem:[%s3267_s3 + $0x80] sm:$0xff]  ;;  %v2485_v4 = vld [vmem:[%s3267_s3 + $0x1b8] sm:$0xff]  ;;  %v2468_v6 = vld [vmem:[%s3267_s3 + $0x130] sm:$0xff] }
  0x2b   :  { %v2454_v3 = vld [vmem:[%s3267_s3 + $0xc0] sm:$0xff]  ;;  %v2493_v5 = vld [vmem:[%s3267_s3 + $0x1f8] sm:$0xff]  ;;  %v2476_v7 = vld [vmem:[%s3267_s3 + $0x170] sm:$0xff] }
  0x2c   :  { %1878 = vmatmul.msk.bf16.vlgmr.msra.gmra.mxu0 %vm262_vm0, %v2671_v26  ;;  %1880 = vmatmul.msk.bf16.vlgmr.msra.gmra.mxu2 %vm262_vm0, %v2671_v26  ;;  %v2484_v8 = vld [vmem:[%s3267_s3 + $0x1b0] sm:$0xff]  ;;  %v2467_v10 = vld [vmem:[%s3267_s3 + $0x128] sm:$0xff]  ;;  %v2466_v14 = vld [vmem:[%s3267_s3 + $0x120] sm:$0xff] }
  0x2d   :  { %1515 = vmatpush.bf16.msra.mxu0 %v2437_v35  ;;  %1541 = vmatpush.bf16.msra.mxu2 %v2453_v37  ;;  %v2492_v9 = vld [vmem:[%s3267_s3 + $0x1f0] sm:$0xff]  ;;  %v2475_v11 = vld [vmem:[%s3267_s3 + $0x168] sm:$0xff]  ;;  %v2474_v15 = vld [vmem:[%s3267_s3 + $0x160] sm:$0xff] }
  0x2e   :  { %1881 = vmatmul.msk.bf16.vlgmr.msra.gmra.mxu3 %vm262_vm0, %v2671_v26  ;;  %1879 = vmatmul.msk.bf16.vlgmr.msra.gmra.mxu1 %vm262_vm0, %v2671_v26  ;;  %v2483_v12 = vld [vmem:[%s3267_s3 + $0x1a8] sm:$0xff]  ;;  %v2482_v16 = vld [vmem:[%s3267_s3 + $0x1a0] sm:$0xff]  ;;  %v2465_v18 = vld [vmem:[%s3267_s3 + $0x118] sm:$0xff] }
  0x2f   :  { %1528 = vmatpush.bf16.msra.mxu1 %v2445_v36  ;;  %1554 = vmatpush.bf16.msra.mxu3 %v2461_v38  ;;  %v2491_v13 = vld [vmem:[%s3267_s3 + $0x1e8] sm:$0xff]  ;;  %v2490_v17 = vld [vmem:[%s3267_s3 + $0x1e0] sm:$0xff]  ;;  %v2473_v19 = vld [vmem:[%s3267_s3 + $0x158] sm:$0xff] }
  0x30   :  { %v2481_v20 = vld [vmem:[%s3267_s3 + $0x198] sm:$0xff]  ;;  %v2464_v22 = vld [vmem:[%s3267_s3 + $0x110] sm:$0xff]  ;;  %v2463_v24 = vld [vmem:[%s3267_s3 + $0x108] sm:$0xff] }
  0x31   :  { %1516 = vmatpush.bf16.msra.mxu0 %v2436_v39  ;;  %1542 = vmatpush.bf16.msra.mxu2 %v2452_v41  ;;  %v2489_v21 = vld [vmem:[%s3267_s3 + $0x1d8] sm:$0xff]  ;;  %v2472_v23 = vld [vmem:[%s3267_s3 + $0x150] sm:$0xff]  ;;  %v2471_v25 = vld [vmem:[%s3267_s3 + $0x148] sm:$0xff] }
  0x32   :  { %v2480_v27 = vld [vmem:[%s3267_s3 + $0x190] sm:$0xff]  ;;  %v2462_v29 = vld [vmem:[%s3267_s3 + $0x100] sm:$0xff]  ;;  %v2479_v31 = vld [vmem:[%s3267_s3 + $0x188] sm:$0xff] }
  0x33   :  { %1529 = vmatpush.bf16.msra.mxu1 %v2444_v40  ;;  %1555 = vmatpush.bf16.msra.mxu3 %v2460_v42  ;;  %v2488_v28 = vld [vmem:[%s3267_s3 + $0x1d0] sm:$0xff]  ;;  %v2470_v30 = vld [vmem:[%s3267_s3 + $0x140] sm:$0xff]  ;;  %v2487_v32 = vld [vmem:[%s3267_s3 + $0x1c8] sm:$0xff] }
  0x34   :  { %v2478_v33 = vld [vmem:[%s3267_s3 + $0x180] sm:$0xff]  ;;  %v2501_v41 = vld [vmem:[%s3267_s3 + $0x238] sm:$0xff] }
  0x35   :  { %1517 = vmatpush.bf16.msra.mxu0 %v2435_v43  ;;  %1543 = vmatpush.bf16.msra.mxu2 %v2451_v45  ;;  %v2486_v34 = vld [vmem:[%s3267_s3 + $0x1c0] sm:$0xff] }
  0x36   :  { %v3041_v35 = vld [vmem:[%s3266_s2] sm:$0xff] }
  0x37   :  { %1530 = vmatpush.bf16.msra.mxu1 %v2443_v44  ;;  %1556 = vmatpush.bf16.msra.mxu3 %v2459_v46  ;;  %v70_v36 = vperm.slane %v3041_v35, 0  ;;  %v71_v37 = vperm.slane %v3041_v35, 1  ;;  %v72_v44 = vperm.slane %v3041_v35, 2  ;;  %v73_v45 = vperm.slane %v3041_v35, 3  ;;  %v2509_v46 = vld [vmem:[%s3267_s3 + $0x278] sm:$0xff] }
  0x39   :  { %1518 = vmatpush.bf16.msra.mxu0 %v2434_v47  ;;  %1544 = vmatpush.bf16.msra.mxu2 %v2450_v49 }
  0x3b   :  { %1531 = vmatpush.bf16.msra.mxu1 %v2442_v48  ;;  %1557 = vmatpush.bf16.msra.mxu3 %v2458_v50  ;;  %v2500_v48 = vld [vmem:[%s3267_s3 + $0x230] sm:$0xff] }
  0x3c   :  { %1882 = vmatmul.msk.bf16.vlgmr.msrb.gmra.mxu0 %vm262_vm0, %v2671_v26  ;;  %1884 = vmatmul.msk.bf16.vlgmr.msrb.gmra.mxu2 %vm262_vm0, %v2671_v26 }
  0x3d   :  { %1519 = vmatpush.bf16.msra.mxu0 %v2433_v51  ;;  %1545 = vmatpush.bf16.msra.mxu2 %v2449_v53 }
  0x3e   :  { %1885 = vmatmul.msk.bf16.vlgmr.msrb.gmra.mxu3 %vm262_vm0, %v2671_v26  ;;  %1883 = vmatmul.msk.bf16.vlgmr.msrb.gmra.mxu1 %vm262_vm0, %v2671_v26  ;;  %v2456_v26 = vld [vmem:[%s3267_s3 + $0xd0] sm:$0xff] }
  0x3f   :  { %1532 = vmatpush.bf16.msra.mxu1 %v2441_v52  ;;  %1558 = vmatpush.bf16.msra.mxu3 %v2457_v54  ;;  %v2508_v54 = vld [vmem:[%s3267_s3 + $0x270] sm:$0xff] }
  0x41   :  { %1520 = vmatpush.bf16.msra.mxu0 %v2432_v55  ;;  %1546 = vmatpush.bf16.msra.mxu2 %v2448_v57  ;;  %v2517_v55 = vld [vmem:[%s3267_s3 + $0x2b8] sm:$0xff] }
  0x43   :  { %1533 = vmatpush.bf16.msra.mxu1 %v2440_v56  ;;  %1559 = vmatpush.bf16.msra.mxu3 %v2456_v26 }
  0x45   :  { %1521 = vmatpush.bf16.msra.mxu0 %v2431_v58  ;;  %1547 = vmatpush.bf16.msra.mxu2 %v2447_v60  ;;  %v2525_v58 = vld [vmem:[%s3267_s3 + $0x2f8] sm:$0xff]  ;;  %v2507_v60 = vld [vmem:[%s3267_s3 + $0x268] sm:$0xff] }
  0x47   :  { %1534 = vmatpush.bf16.msra.mxu1 %v2439_v59  ;;  %1560 = vmatpush.bf16.msra.mxu3 %v2455_v61  ;;  %v2499_v59 = vld [vmem:[%s3267_s3 + $0x228] sm:$0xff]  ;;  %v2516_v61 = vld [vmem:[%s3267_s3 + $0x2b0] sm:$0xff] }
  0x49   :  { %1522 = vmatpush.bf16.msra.mxu0 %v2430_v62  ;;  %1548 = vmatpush.bf16.msra.mxu2 %v2446_v2  ;;  %v74_v62 = vperm.slane %v3041_v35, 4 }
  0x4b   :  { %1535 = vmatpush.bf16.msra.mxu1 %v2438_v0  ;;  %1561 = vmatpush.bf16.msra.mxu3 %v2454_v3  ;;  %v2498_v0 = vld [vmem:[%s3267_s3 + $0x220] sm:$0xff]  ;;  %v75_v3 = vperm.slane %v3041_v35, 5 }
  0x4d   :  { %1567 = vmatpush.bf16.msrb.mxu0 %v2469_v63  ;;  %1593 = vmatpush.bf16.msrb.mxu2 %v2485_v4  ;;  %v2524_v63 = vld [vmem:[%s3267_s3 + $0x2f0] sm:$0xff] }
  0x4f   :  { %1580 = vmatpush.bf16.msrb.mxu1 %v2477_v1  ;;  %1606 = vmatpush.bf16.msrb.mxu3 %v2493_v5 }
  0x51   :  { %1568 = vmatpush.bf16.msrb.mxu0 %v2468_v6  ;;  %1594 = vmatpush.bf16.msrb.mxu2 %v2484_v8  ;;  %v2506_v6 = vld [vmem:[%s3267_s3 + $0x260] sm:$0xff] }
  0x53   :  { %1581 = vmatpush.bf16.msrb.mxu1 %v2476_v7  ;;  %1607 = vmatpush.bf16.msrb.mxu3 %v2492_v9  ;;  %v2515_v7 = vld [vmem:[%s3267_s3 + $0x2a8] sm:$0xff] }
  0x54   :  { %v2523_v9 = vld [vmem:[%s3267_s3 + $0x2e8] sm:$0xff] }
  0x55   :  { %1569 = vmatpush.bf16.msrb.mxu0 %v2467_v10  ;;  %1595 = vmatpush.bf16.msrb.mxu2 %v2483_v12  ;;  %v2497_v12 = vld [vmem:[%s3267_s3 + $0x218] sm:$0xff] }
  0x57   :  { %1582 = vmatpush.bf16.msrb.mxu1 %v2475_v11  ;;  %1608 = vmatpush.bf16.msrb.mxu3 %v2491_v13  ;;  %v76_v13 = vperm.slane %v3041_v35, 6 }
  0x59   :  { %1570 = vmatpush.bf16.msrb.mxu0 %v2466_v14  ;;  %1596 = vmatpush.bf16.msrb.mxu2 %v2482_v16  ;;  %v77_v14 = vperm.slane %v3041_v35, 7  ;;  %v2505_v16 = vld [vmem:[%s3267_s3 + $0x258] sm:$0xff]  ;;  %v2512_v35 = vld [vmem:[%s3267_s3 + $0x290] sm:$0xff] }
  0x5b   :  { %1583 = vmatpush.bf16.msrb.mxu1 %v2474_v15  ;;  %1609 = vmatpush.bf16.msrb.mxu3 %v2490_v17  ;;  %v2514_v17 = vld [vmem:[%s3267_s3 + $0x2a0] sm:$0xff] }
  0x5d   :  { %1571 = vmatpush.bf16.msrb.mxu0 %v2465_v18  ;;  %1597 = vmatpush.bf16.msrb.mxu2 %v2481_v20  ;;  %v2522_v18 = vld [vmem:[%s3267_s3 + $0x2e0] sm:$0xff] }
  0x5f   :  { %1584 = vmatpush.bf16.msrb.mxu1 %v2473_v19  ;;  %1610 = vmatpush.bf16.msrb.mxu3 %v2489_v21  ;;  %v2496_v21 = vld [vmem:[%s3267_s3 + $0x210] sm:$0xff] }
  0x61   :  { %1572 = vmatpush.bf16.msrb.mxu0 %v2464_v22  ;;  %1598 = vmatpush.bf16.msrb.mxu2 %v2480_v27  ;;  %v2513_v27 = vld [vmem:[%s3267_s3 + $0x298] sm:$0xff] }
  0x63   :  { %1585 = vmatpush.bf16.msrb.mxu1 %v2472_v23  ;;  %1611 = vmatpush.bf16.msrb.mxu3 %v2488_v28 }
  0x65   :  { %1573 = vmatpush.bf16.msrb.mxu0 %v2463_v24  ;;  %1599 = vmatpush.bf16.msrb.mxu2 %v2479_v31  ;;  %v2521_v31 = vld [vmem:[%s3267_s3 + $0x2d8] sm:$0xff] }
  0x67   :  { %1586 = vmatpush.bf16.msrb.mxu1 %v2471_v25  ;;  %1612 = vmatpush.bf16.msrb.mxu3 %v2487_v32  ;;  %v2504_v25 = vld [vmem:[%s3267_s3 + $0x250] sm:$0xff]  ;;  %v3120_v32 = vld [vmem:[%s3266_s2 + $0x8] sm:$0xff] }
  0x69   :  { %1574 = vmatpush.bf16.msrb.mxu0 %v2462_v29  ;;  %1600 = vmatpush.bf16.msrb.mxu2 %v2478_v33  ;;  %v2495_v33 = vld [vmem:[%s3267_s3 + $0x208] sm:$0xff] }
  0x6b   :  { %1587 = vmatpush.bf16.msrb.mxu1 %v2470_v30  ;;  %1613 = vmatpush.bf16.msrb.mxu3 %v2486_v34  ;;  %v2503_v34 = vld [vmem:[%s3267_s3 + $0x248] sm:$0xff] }
  0x89   :  { %v275_v38 = vpop.f32.mrf.mxu0 }
  0x8a   :  { %v276_v39 = vadd.f32 %v275_v38, %v70_v36  ;;  %v78_v36 = vperm.slane %v3120_v32, 0 }
  0x8b   :  { %v288_v40 = vpop.f32.mrf.mxu1 }
  0x8c   :  { %v474_v42 = vpack.c.bf16 %v276_v39, %v276_v39  ;;  %v289_v43 = vadd.f32 %v288_v40, %v71_v37  ;;  %v2520_v37 = vld [vmem:[%s3267_s3 + $0x2d0] sm:$0xff]  ;;  %v2494_v40 = vld [vmem:[%s3267_s3 + $0x200] sm:$0xff] }
  0x8e   :  { %v475_v47 = vpack.c.bf16 %v289_v43, %v289_v43  ;;  %1523 = vmatmul.bf16.vlgmr.msra.gmra.mxu0 %v474_v42  ;;  %v2533_v43 = vld [vmem:[%s3267_s3 + $0x338] sm:$0xff] }
  0x8f   :  { %1619 = vmatpush.bf16.msra.mxu0 %v2501_v41  ;;  %v301_v49 = vpop.f32.mrf.mxu2  ;;  %v79_v41 = vperm.slane %v3120_v32, 1 }
  0x90   :  { %1536 = vmatmul.bf16.vlgmr.msra.gmra.mxu1 %v475_v47  ;;  %v302_v51 = vadd.f32 %v301_v49, %v72_v44  ;;  %v2541_v49 = vld [vmem:[%s3267_s3 + $0x378] sm:$0xff] }
  0x91   :  { %v314_v50 = vpop.f32.mrf.mxu3  ;;  %1632 = vmatpush.bf16.msra.mxu1 %v2509_v46  ;;  %v277_v53 = vpop.f32.mrf.mxu0  ;;  %v2511_v46 = vld [vmem:[%s3267_s3 + $0x288] sm:$0xff] }
  0x92   :  { %v315_v52 = vadd.f32 %v314_v50, %v73_v45  ;;  %v476_v56 = vpack.c.bf16 %v302_v51, %v302_v51  ;;  %v2502_v45 = vld [vmem:[%s3267_s3 + $0x240] sm:$0xff]  ;;  %v2532_v53 = vld [vmem:[%s3267_s3 + $0x330] sm:$0xff] }
  0x93   :  { %1620 = vmatpush.bf16.msra.mxu0 %v2500_v48  ;;  %v290_v26 = vpop.f32.mrf.mxu1  ;;  %v2519_v48 = vld [vmem:[%s3267_s3 + $0x2c8] sm:$0xff] }
  0x94   :  { %v477_v57 = vpack.c.bf16 %v315_v52, %v315_v52  ;;  %1549 = vmatmul.bf16.vlgmr.msra.gmra.mxu2 %v476_v56  ;;  %v80_v52 = vperm.slane %v3120_v32, 2  ;;  %v2510_v56 = vld [vmem:[%s3267_s3 + $0x280] sm:$0xff]  ;;  %v2540_v26 = vld [vmem:[%s3267_s3 + $0x370] sm:$0xff] }
  0x95   :  { %1633 = vmatpush.bf16.msra.mxu1 %v2508_v54  ;;  %1645 = vmatpush.bf16.msra.mxu2 %v2517_v55  ;;  %v81_v54 = vperm.slane %v3120_v32, 3 }
  0x96   :  { %1562 = vmatmul.bf16.vlgmr.msra.gmra.mxu3 %v477_v57  ;;  %v2518_v57 = vld [vmem:[%s3267_s3 + $0x2c0] sm:$0xff] }
  0x97   :  { %1658 = vmatpush.bf16.msra.mxu3 %v2525_v58  ;;  %1621 = vmatpush.bf16.msra.mxu0 %v2499_v59  ;;  %v303_v1 = vpop.f32.mrf.mxu2 }
  0x99   :  { %v316_v2 = vpop.f32.mrf.mxu3  ;;  %v327_v4 = vpop.f32.mrf.mxu0  ;;  %1634 = vmatpush.bf16.msra.mxu1 %v2507_v60  ;;  %1646 = vmatpush.bf16.msra.mxu2 %v2516_v61  ;;  %v2549_v60 = vld [vmem:[%s3267_s3 + $0x3b8] sm:$0xff] }
  0x9a   :  { %v328_v5 = vadd.f32 %v327_v4, %v74_v62  ;;  %v2557_v61 = vld [vmem:[%s3267_s3 + $0x3f8] sm:$0xff]  ;;  %v2539_v4 = vld [vmem:[%s3267_s3 + $0x368] sm:$0xff] }
  0x9b   :  { %1659 = vmatpush.bf16.msra.mxu3 %v2524_v63  ;;  %1622 = vmatpush.bf16.msra.mxu0 %v2498_v0  ;;  %v340_v8 = vpop.f32.mrf.mxu1  ;;  %v2531_v0 = vld [vmem:[%s3267_s3 + $0x328] sm:$0xff] }
  0x9c   :  { %v478_v10 = vpack.c.bf16 %v328_v5, %v328_v5  ;;  %v341_v11 = vadd.f32 %v340_v8, %v75_v3  ;;  %v2530_v8 = vld [vmem:[%s3267_s3 + $0x320] sm:$0xff] }
  0x9d   :  { %1635 = vmatpush.bf16.msra.mxu1 %v2506_v6  ;;  %1647 = vmatpush.bf16.msra.mxu2 %v2515_v7  ;;  %v2548_v6 = vld [vmem:[%s3267_s3 + $0x3b0] sm:$0xff] }
  0x9e   :  { %v479_v15 = vpack.c.bf16 %v341_v11, %v341_v11  ;;  %1575 = vmatmul.bf16.vlgmr.msrb.gmra.mxu0 %v478_v10  ;;  %v2556_v7 = vld [vmem:[%s3267_s3 + $0x3f0] sm:$0xff]  ;;  %v2547_v10 = vld [vmem:[%s3267_s3 + $0x3a8] sm:$0xff] }
  0x9f   :  { %1660 = vmatpush.bf16.msra.mxu3 %v2523_v9  ;;  %1623 = vmatpush.bf16.msra.mxu0 %v2497_v12  ;;  %v353_v19 = vpop.f32.mrf.mxu2  ;;  %v2538_v9 = vld [vmem:[%s3267_s3 + $0x360] sm:$0xff]  ;;  %v2555_v11 = vld [vmem:[%s3267_s3 + $0x3e8] sm:$0xff] }
  0xa0   :  { %1588 = vmatmul.bf16.vlgmr.msrb.gmra.mxu1 %v479_v15  ;;  %v354_v22 = vadd.f32 %v353_v19, %v76_v13  ;;  %v2554_v19 = vld [vmem:[%s3267_s3 + $0x3e0] sm:$0xff] }
  0xa1   :  { %v366_v20 = vpop.f32.mrf.mxu3  ;;  %v329_v23 = vpop.f32.mrf.mxu0  ;;  %1636 = vmatpush.bf16.msra.mxu1 %v2505_v16  ;;  %1648 = vmatpush.bf16.msra.mxu2 %v2514_v17  ;;  %v2537_v16 = vld [vmem:[%s3267_s3 + $0x358] sm:$0xff] }
  0xa2   :  { %v367_v24 = vadd.f32 %v366_v20, %v77_v14  ;;  %v480_v28 = vpack.c.bf16 %v354_v22, %v354_v22  ;;  %v2529_v14 = vld [vmem:[%s3267_s3 + $0x318] sm:$0xff]  ;;  %v2528_v20 = vld [vmem:[%s3267_s3 + $0x310] sm:$0xff] }
  0xa3   :  { %1661 = vmatpush.bf16.msra.mxu3 %v2522_v18  ;;  %v342_v30 = vpop.f32.mrf.mxu1  ;;  %1624 = vmatpush.bf16.msra.mxu0 %v2496_v21  ;;  %v2546_v18 = vld [vmem:[%s3267_s3 + $0x3a0] sm:$0xff]  ;;  %v2536_v21 = vld [vmem:[%s3267_s3 + $0x350] sm:$0xff]  ;;  %v2545_v22 = vld [vmem:[%s3267_s3 + $0x398] sm:$0xff] }
  0xa4   :  { %v481_v29 = vpack.c.bf16 %v367_v24, %v367_v24  ;;  %1601 = vmatmul.bf16.vlgmr.msrb.gmra.mxu2 %v480_v28  ;;  %v2553_v23 = vld [vmem:[%s3267_s3 + $0x3d8] sm:$0xff]  ;;  %v82_v28 = vperm.slane %v3120_v32, 4  ;;  %v83_v30 = vperm.slane %v3120_v32, 5 }
  0xa5   :  { %1637 = vmatpush.bf16.msra.mxu1 %v2504_v25  ;;  %1649 = vmatpush.bf16.msra.mxu2 %v2513_v27  ;;  %v2527_v27 = vld [vmem:[%s3267_s3 + $0x308] sm:$0xff] }
  0xa6   :  { %1614 = vmatmul.bf16.vlgmr.msrb.gmra.mxu3 %v481_v29 }
  0xa7   :  { %1662 = vmatpush.bf16.msra.mxu3 %v2521_v31  ;;  %1625 = vmatpush.bf16.msra.mxu0 %v2495_v33  ;;  %v355_v38 = vpop.f32.mrf.mxu2  ;;  %v2535_v31 = vld [vmem:[%s3267_s3 + $0x348] sm:$0xff] }
  0xa9   :  { %v368_v39 = vpop.f32.mrf.mxu3  ;;  %v379_v42 = vpop.f32.mrf.mxu0  ;;  %1638 = vmatpush.bf16.msra.mxu1 %v2503_v34  ;;  %1650 = vmatpush.bf16.msra.mxu2 %v2512_v35  ;;  %v2544_v34 = vld [vmem:[%s3267_s3 + $0x390] sm:$0xff] }
  0xaa   :  { %v380_v44 = vadd.f32 %v379_v42, %v78_v36  ;;  %v2552_v35 = vld [vmem:[%s3267_s3 + $0x3d0] sm:$0xff]  ;;  %v84_v39 = vperm.slane %v3120_v32, 6  ;;  %v2543_v42 = vld [vmem:[%s3267_s3 + $0x388] sm:$0xff] }
  0xab   :  { %1663 = vmatpush.bf16.msra.mxu3 %v2520_v37  ;;  %v392_v47 = vpop.f32.mrf.mxu1  ;;  %1626 = vmatpush.bf16.msra.mxu0 %v2494_v40  ;;  %v2526_v37 = vld [vmem:[%s3267_s3 + $0x300] sm:$0xff]  ;;  %v85_v40 = vperm.slane %v3120_v32, 7 }
  0xac   :  { %v482_v50 = vpack.c.bf16 %v380_v44, %v380_v44  ;;  %v393_v51 = vadd.f32 %v392_v47, %v79_v41  ;;  %v2534_v41 = vld [vmem:[%s3267_s3 + $0x340] sm:$0xff] }
  0xad   :  { %1639 = vmatpush.bf16.msra.mxu1 %v2502_v45  ;;  %1651 = vmatpush.bf16.msra.mxu2 %v2511_v46 }
  0xae   :  { %v483_v55 = vpack.c.bf16 %v393_v51, %v393_v51  ;;  %1627 = vmatmul.bf16.vlgmr.msra.gmra.mxu0 %v482_v50  ;;  %v2550_v50 = vld [vmem:[%s3267_s3 + $0x3c0] sm:$0xff] }
  0xaf   :  { %1671 = vmatpush.bf16.msrb.mxu0 %v2533_v43  ;;  %1664 = vmatpush.bf16.msra.mxu3 %v2519_v48  ;;  %v405_v58 = vpop.f32.mrf.mxu2  ;;  %v2551_v43 = vld [vmem:[%s3267_s3 + $0x3c8] sm:$0xff] }
  0xb0   :  { %v406_v62 = vadd.f32 %v405_v58, %v80_v52  ;;  %1640 = vmatmul.bf16.vlgmr.msra.gmra.mxu1 %v483_v55 }
  0xb1   :  { %1684 = vmatpush.bf16.msrb.mxu1 %v2541_v49  ;;  %v418_v59 = vpop.f32.mrf.mxu3  ;;  %v381_v1 = vpop.f32.mrf.mxu0  ;;  %1652 = vmatpush.bf16.msra.mxu2 %v2510_v56  ;;  %v2542_v49 = vld [vmem:[%s3267_s3 + $0x380] sm:$0xff] }
  0xb2   :  { %v419_v63 = vadd.f32 %v418_v59, %v81_v54  ;;  %v484_v2 = vpack.c.bf16 %v406_v62, %v406_v62 }
  0xb3   :  { %1672 = vmatpush.bf16.msrb.mxu0 %v2532_v53  ;;  %1665 = vmatpush.bf16.msra.mxu3 %v2518_v57  ;;  %v394_v5 = vpop.f32.mrf.mxu1 }
  0xb4   :  { %v485_v3 = vpack.c.bf16 %v419_v63, %v419_v63  ;;  %1653 = vmatmul.bf16.vlgmr.msra.gmra.mxu2 %v484_v2 }
  0xb5   :  { %1685 = vmatpush.bf16.msrb.mxu1 %v2540_v26  ;;  %1697 = vmatpush.bf16.msrb.mxu2 %v2549_v60 }
  0xb6   :  { %1666 = vmatmul.bf16.vlgmr.msra.gmra.mxu3 %v485_v3 }
  0xb7   :  { %1710 = vmatpush.bf16.msrb.mxu3 %v2557_v61  ;;  %1673 = vmatpush.bf16.msrb.mxu0 %v2531_v0  ;;  %v407_v12 = vpop.f32.mrf.mxu2 }
  0xb9   :  { %1686 = vmatpush.bf16.msrb.mxu1 %v2539_v4  ;;  %1698 = vmatpush.bf16.msrb.mxu2 %v2548_v6  ;;  %v420_v13 = vpop.f32.mrf.mxu3  ;;  %v431_v15 = vpop.f32.mrf.mxu0 }
  0xba   :  { %v432_v36 = vadd.f32 %v431_v15, %v82_v28 }
  0xbb   :  { %1711 = vmatpush.bf16.msrb.mxu3 %v2556_v7  ;;  %1674 = vmatpush.bf16.msrb.mxu0 %v2530_v8  ;;  %v444_v17 = vpop.f32.mrf.mxu1  ;;  %v2559_v8 = vld [vmem:[%s3268_s4] ss:$0 sm:$0xff]  ;;  %s2586_s4 = smov [#allocation2]  }
  0xbc   :  { %v445_v38 = vadd.f32 %v444_v17, %v83_v30  ;;  %v486_v46 = vpack.c.bf16 %v432_v36, %v432_v36  ;;  %31 = vst.msk [vmem:[#allocation2] sm:$0xff] %vm30_vm1, %v2559_v8  ;;  %s1731_s8 = sshll.u32 %s2586_s4, 4  ;;  %s1732_s8 = int_to_ptr.vmem [resolvable:$true] %s1731_s8 }
  0xbd   :  { %1687 = vmatpush.bf16.msrb.mxu1 %v2538_v9  ;;  %1699 = vmatpush.bf16.msrb.mxu2 %v2547_v10 }
  0xbe   :  { %v487_v32 = vpack.c.bf16 %v445_v38, %v445_v38 }
  0xbf   :  { %1712 = vmatpush.bf16.msrb.mxu3 %v2555_v11  ;;  %1675 = vmatpush.bf16.msrb.mxu0 %v2529_v14  ;;  %v457_v24 = vpop.f32.mrf.mxu2 }
  0xc0   :  { %v458_v47 = vadd.f32 %v457_v24, %v84_v39 }
  0xc1   :  { %1688 = vmatpush.bf16.msrb.mxu1 %v2537_v16  ;;  %1700 = vmatpush.bf16.msrb.mxu2 %v2546_v18  ;;  %v470_v25 = vpop.f32.mrf.mxu3  ;;  %v433_v29 = vpop.f32.mrf.mxu0 }
  0xc2   :  { %v471_v48 = vadd.f32 %v470_v25, %v85_v40  ;;  %v488_v51 = vpack.c.bf16 %v458_v47, %v458_v47 }
  0xc3   :  { %1713 = vmatpush.bf16.msrb.mxu3 %v2554_v19  ;;  %1676 = vmatpush.bf16.msrb.mxu0 %v2528_v20  ;;  %v446_v33 = vpop.f32.mrf.mxu1 }
  0xc4   :  { %v489_v52 = vpack.c.bf16 %v471_v48, %v471_v48 }
  0xc5   :  { %1689 = vmatpush.bf16.msrb.mxu1 %v2536_v21  ;;  %1701 = vmatpush.bf16.msrb.mxu2 %v2545_v22 }
  0xc7   :  { %1714 = vmatpush.bf16.msrb.mxu3 %v2553_v23  ;;  %1677 = vmatpush.bf16.msrb.mxu0 %v2527_v27  ;;  %v459_v44 = vpop.f32.mrf.mxu2 }
  0xc9   :  { %1690 = vmatpush.bf16.msrb.mxu1 %v2535_v31  ;;  %1702 = vmatpush.bf16.msrb.mxu2 %v2544_v34  ;;  %v472_v45 = vpop.f32.mrf.mxu3 }
  0xcb   :  { %1715 = vmatpush.bf16.msrb.mxu3 %v2552_v35  ;;  %1678 = vmatpush.bf16.msrb.mxu0 %v2526_v37  ;;  %v490_v35 = vld [vmem:[#allocation2] sm:$0xff] }
  0xcd   :  { %1691 = vmatpush.bf16.msrb.mxu1 %v2534_v41  ;;  %1703 = vmatpush.bf16.msrb.mxu2 %v2543_v42 }
  0xce   :  { %1679 = vmatmul.bf16.vlgmr.msrb.gmra.mxu0 %v486_v46 }
  0xcf   :  { %1716 = vmatpush.bf16.msrb.mxu3 %v2551_v43 }
  0xd0   :  { %1692 = vmatmul.bf16.vlgmr.msrb.gmra.mxu1 %v487_v32 }
  0xd1   :  { %1704 = vmatpush.bf16.msrb.mxu2 %v2542_v49 }
  0xd3   :  { %1717 = vmatpush.bf16.msrb.mxu3 %v2550_v50 }
  0xd4   :  { %1705 = vmatmul.bf16.vlgmr.msrb.gmra.mxu2 %v488_v51 }
  0xd6   :  { %1718 = vmatmul.bf16.vlgmr.msrb.gmra.mxu3 %v489_v52 }
 0x10b   :  { %v1524_v53 = vpop.f32.mrf.mxu0 }
 0x10d   :  { %v1537_v54 = vpop.f32.mrf.mxu1 }
 0x10e   :  { %v1538_v2 = vadd.f32 %v1537_v54, %v1524_v53 }
 0x113   :  { %v1526_v55 = vpop.f32.mrf.mxu0 }
 0x115   :  { %v1539_v56 = vpop.f32.mrf.mxu1 }
 0x117   :  { %v1550_v57 = vpop.f32.mrf.mxu2 }
 0x118   :  { %v1551_v5 = vadd.f32 %v1550_v57, %v1538_v2 }
 0x119   :  { %v1563_v26 = vpop.f32.mrf.mxu3 }
 0x11a   :  { %v1564_v9 = vadd.f32 %v1563_v26, %v1551_v5 }
 0x11b   :  { %v1576_v58 = vpop.f32.mrf.mxu0 }
 0x11c   :  { %v1577_v12 = vadd.f32 %v1576_v58, %v1564_v9 }
 0x11d   :  { %v1589_v59 = vpop.f32.mrf.mxu1 }
 0x11e   :  { %v1590_v15 = vadd.f32 %v1589_v59, %v1577_v12 }
 0x11f   :  { %v1552_v60 = vpop.f32.mrf.mxu2 }
 0x121   :  { %v1565_v61 = vpop.f32.mrf.mxu3 }
 0x123   :  { %v1578_v62 = vpop.f32.mrf.mxu0 }
 0x125   :  { %v1591_v63 = vpop.f32.mrf.mxu1 }
 0x127   :  { %v1602_v0 = vpop.f32.mrf.mxu2 }
 0x128   :  { %v1603_v16 = vadd.f32 %v1602_v0, %v1590_v15 }
 0x129   :  { %v1615_v1 = vpop.f32.mrf.mxu3 }
 0x12a   :  { %v1616_v18 = vadd.f32 %v1615_v1, %v1603_v16 }
 0x12b   :  { %v1628_v3 = vpop.f32.mrf.mxu0 }
 0x12c   :  { %v1629_v20 = vadd.f32 %v1628_v3, %v1616_v18 }
 0x12d   :  { %v1641_v4 = vpop.f32.mrf.mxu1 }
 0x12e   :  { %v1642_v21 = vadd.f32 %v1641_v4, %v1629_v20 }
 0x12f   :  { %v1604_v6 = vpop.f32.mrf.mxu2 }
 0x131   :  { %v1617_v7 = vpop.f32.mrf.mxu3 }
 0x133   :  { %v1630_v10 = vpop.f32.mrf.mxu0 }
 0x135   :  { %v1643_v11 = vpop.f32.mrf.mxu1 }
 0x137   :  { %v1654_v13 = vpop.f32.mrf.mxu2 }
 0x138   :  { %v1655_v23 = vadd.f32 %v1654_v13, %v1642_v21 }
 0x139   :  { %v1667_v14 = vpop.f32.mrf.mxu3 }
 0x13a   :  { %v1668_v25 = vadd.f32 %v1667_v14, %v1655_v23 }
 0x13f   :  { %v1656_v17 = vpop.f32.mrf.mxu2 }
 0x141   :  { %v1669_v19 = vpop.f32.mrf.mxu3 }
 0x14b   :  { %v1680_v22 = vpop.f32.mrf.mxu0 }
 0x14c   :  { %v1681_v27 = vadd.f32 %v1680_v22, %v1668_v25 }
 0x14d   :  { %v1693_v24 = vpop.f32.mrf.mxu1 }
 0x14e   :  { %v1694_v30 = vadd.f32 %v1693_v24, %v1681_v27 }
 0x153   :  { %v1682_v28 = vpop.f32.mrf.mxu0 }
 0x155   :  { %v1695_v29 = vpop.f32.mrf.mxu1 }
 0x157   :  { %v1706_v31 = vpop.f32.mrf.mxu2 }
 0x158   :  { %v1707_v34 = vadd.f32 %v1706_v31, %v1694_v30 }
 0x159   :  { %v1719_v33 = vpop.f32.mrf.mxu3 }
 0x15a   :  { %v1720_v36 = vadd.f32 %v1719_v33, %v1707_v34 }
 0x15c   :  { %v1723_v37 = vadd.f32 %v1720_v36, %v490_v35 }
 0x15e   :  { %1725 = vst.msk [vmem:[#allocation2] sm:$0xff] %vm30_vm1, %v1723_v37 }
 0x15f   :  { %v1708_v38 = vpop.f32.mrf.mxu2  ;;  %1736 = dma.vmem_to_hbm [thread:$0]  %s1732_s8, 128, %s1734_s10, [#allocation3]  }
 0x161   :  { %v1721_v39 = vpop.f32.mrf.mxu3 }
 0x162   :  { %2584 = dma.done.wait [#allocation3], 128  }
 0x163   :  { %2585 = vsyncadd [#allocation3], 4294967168 }
 0x164   :  { %1741 = vsyncpa [#allocation3], 1 }

</bundles_post_ra>
